<compile_context>
chip_gen: v5e
topology: v5e:2x2
jax: 0.10.0
libtpu: 0.0.40
codegen_flags: <defaults>
</compile_context>

<pallas_src>
import jax
import jax.numpy as jnp
from jax import lax
from jax.experimental import pallas as pl
from jax.experimental.pallas import tpu as pltpu
from jax.scipy.special import ndtri as _ndtri_reference


# ---------------------------------------------------------------------------
# Tunables
# ---------------------------------------------------------------------------

_WIDTH_CANDIDATES = (8192, 4096, 2048, 1024, 512, 256, 128)  # lane-dense widths
_TARGET_TILE_BYTES = 4 << 20   # per VMEM buffer; 3 arrays x 2 bufs x 4 MiB = 24 MiB
_VMEM_LIMIT_BYTES = 32 << 20   # explicit: above v5e's 16 MiB scoped default,
                               # well under v7x's 64 MiB physical VMEM
_MIN_GRID_STEPS = 8            # >= 4 grid steps per TensorCore on v7x megacore
_SMALL_ELEMENTS = 1 << 20      # below this, plain jnp beats pallas call overhead


# ---------------------------------------------------------------------------
# Portable in-kernel RNG (plain jnp ops only -> lowers on Mosaic and interpret)
# ---------------------------------------------------------------------------

def _mix_bits(ctr_u32, s0_u32, s1_u32):
    """Counter-based hash (lowbias32 core) keyed by two 32-bit seed words."""
    x = ctr_u32 * jnp.uint32(0x9E3779B9) + s0_u32
    x = x ^ s1_u32
    x = x ^ (x >> 16)
    x = x * jnp.uint32(0x7FEB352D)
    x = x ^ (x >> 15)
    x = x * jnp.uint32(0x846CA68B)
    x = x ^ (x >> 16)
    return x


def _ndtri_from_uniform(p, pc):
    """Acklam's rational approximation to the inverse standard-normal CDF.

    `p` is a uniform strictly inside (0, 1); `pc` is its exact complement
    (computed without cancellation), so neither log() can hit 0 and both
    tails stay finite -> no NaN/Inf in the unselected jnp.where branches.
    Only uses +,*,/,log,sqrt,where -> VPU/EUP friendly, no sin/cos needed.
    """
    a1, a2, a3 = -3.969683028665376e+01, 2.209460984245205e+02, -2.759285104469687e+02
    a4, a5, a6 = 1.383577518672690e+02, -3.066479806614716e+01, 2.506628277459239e+00
    b1, b2, b3 = -5.447609879822406e+01, 1.615858368580409e+02, -1.556989798598866e+02
    b4, b5 = 6.680131188771972e+01, -1.328068155288572e+01
    c1, c2, c3 = -7.784894002430293e-03, -3.223964580411365e-01, -2.400758277161838e+00
    c4, c5, c6 = -2.549732539343734e+00, 4.374664141464968e+00, 2.938163982698783e+00
    d1, d2 = 7.784695709041462e-03, 3.224671290700398e-01
    d3, d4 = 2.445134137142996e+00, 3.754408661907416e+00
    p_low = 0.02425

    # Central region.
    q = p - 0.5
    r = q * q
    x_cen = ((((((a1 * r + a2) * r + a3) * r + a4) * r + a5) * r + a6) * q) / \
            (((((b1 * r + b2) * r + b3) * r + b4) * r + b5) * r + 1.0)
    # Lower tail (p < p_low).
    ql = jnp.sqrt(-2.0 * jnp.log(p))
    x_low = (((((c1 * ql + c2) * ql + c3) * ql + c4) * ql + c5) * ql + c6) / \
            ((((d1 * ql + d2) * ql + d3) * ql + d4) * ql + 1.0)
    # Upper tail (pc < p_low  <=>  p > 1 - p_low); uses the exact complement.
    qu = jnp.sqrt(-2.0 * jnp.log(pc))
    x_up = -(((((c1 * qu + c2) * qu + c3) * qu + c4) * qu + c5) * qu + c6) / \
            ((((d1 * qu + d2) * qu + d3) * qu + d4) * qu + 1.0)
    return jnp.where(p < p_low, x_low, jnp.where(pc < p_low, x_up, x_cen))


# ---------------------------------------------------------------------------
# Kernels
# ---------------------------------------------------------------------------

def _reparam_prng_kernel(seed_ref, mu_ref, logvar_ref, z_ref):
    """z = eps * exp(0.5*logvar) + mu, eps ~ N(0,1) drawn on-chip.

    The RNG counter is the *global* flat element index, so the stream is
    independent of block_rows/width tiling and of grid-step execution order
    ("parallel" sharding across v7x's two TensorCores is safe).
    """
    blk_rows, width = z_ref.shape
    row0 = pl.program_id(0) * blk_rows

    rows_i = lax.broadcasted_iota(jnp.int32, (blk_rows, width), 0) + row0
    cols_i = lax.broadcasted_iota(jnp.int32, (blk_rows, width), 1)
    ctr = (rows_i * width + cols_i).astype(jnp.uint32)

    s0 = seed_ref[0].astype(jnp.uint32)
    s1 = seed_ref[1].astype(jnp.uint32)
    bits = _mix_bits(ctr, s0, s1)

    # 24-bit uniform and its exact complement, both strictly inside (0, 1).
    n24 = (bits >> 8).astype(jnp.int32).astype(jnp.float32)   # in [0, 2^24)
    inv24 = 1.0 / 16777216.0
    u = (n24 + 0.5) * inv24
    uc = ((16777215.0 - n24) + 0.5) * inv24
    eps = _ndtri_from_uniform(u, uc)

    # f32 math regardless of (possibly bf16) input dtype.
    std = jnp.exp(0.5 * logvar_ref[...].astype(jnp.float32))
    z = eps * std + mu_ref[...].astype(jnp.float32)
    z_ref[...] = z.astype(z_ref.dtype)


def _reparam_eps_kernel(mu_ref, logvar_ref, eps_ref, z_ref):
    """Reference path: eps supplied from the host (torch.randn_like semantics)."""
    std = jnp.exp(0.5 * logvar_ref[...].astype(jnp.float32))
    z = eps_ref[...].astype(jnp.float32) * std + mu_ref[...].astype(jnp.float32)
    z_ref[...] = z.astype(z_ref.dtype)


# ---------------------------------------------------------------------------
# Layout / tiling helpers
# ---------------------------------------------------------------------------

def _lane_dense_2d(x):
    """Flatten to a wide lane-dense (rows, width) slab.

    Pads the flat array to a multiple of 128 (sliced back by the caller) so
    stores are always full-width vst, never masked vst.msk.
    """
    n = x.size
    n_pad = -(-n // 128) * 128
    flat = x.reshape(-1)
    if n_pad != n:
        flat = jnp.pad(flat, (0, n_pad - n))
    for w in _WIDTH_CANDIDATES:
        if n_pad % w == 0:
            return flat.reshape(n_pad // w, w)
    return flat.reshape(n_pad // 128, 128)   # unreachable (n_pad % 128 == 0)


def _pick_block_rows(rows, width, itemsize,
                     target_bytes=_TARGET_TILE_BYTES, min_steps=_MIN_GRID_STEPS):
    """Row tile: ~target_bytes per VMEM buffer, multiple of 8 sublanes, and
    small enough that the grid has >= min_steps steps (pipeline + 2 TCs)."""
    budget = max(1, target_bytes // max(1, width * itemsize))
    cap = -(-rows // min_steps)          # cdiv(rows, min_steps)
    block = min(budget, cap)
    if block >= rows:
        return rows                      # single full-axis tile (always legal)
    block = max(8, (block // 8) * 8)     # keep (8,128)-aligned vld/vst
    return min(block, rows)


def _key_to_seed_words(key):
    """Two int32 seed words taken directly from the PRNG key bits.

    Avoids the extra jax.random.randint dispatch + 4-byte HBM round trip
    that was on the critical path before.
    """
    def _is_typed_key(k):
        try:
            return jax.dtypes.issubdtype(k.dtype, jax.dtypes.prng_key)
        except (AttributeError, TypeError):
            return False

    if _is_typed_key(key):
        data = jax.random.key_data(key)
    else:
        data = jnp.atleast_1d(jnp.asarray(key))
    data = jnp.ravel(data).astype(jnp.uint32)
    if data.size < 2:
        data = jnp.concatenate([data, data ^ jnp.uint32(0x9E3779B9)])
    return lax.bitcast_convert_type(data[:2], jnp.int32)


# ---------------------------------------------------------------------------
# Wrappers
# ---------------------------------------------------------------------------

def reparameterize_pallas(mu, logvar, seed_words, *, block_rows=None):
    """Performance path: eps generated in-kernel (2 HBM inputs, 1 output)."""
    assert mu.shape == logvar.shape, (mu.shape, logvar.shape)
    orig_shape = mu.shape
    n = int(mu.size)

    mu2 = _lane_dense_2d(mu)
    lv2 = _lane_dense_2d(logvar)
    rows, width = mu2.shape

    if block_rows is None:
        block_rows = _pick_block_rows(rows, width, mu2.dtype.itemsize)
    grid = (pl.cdiv(rows, block_rows),)

    # index_map receives (grid idx, *scalar-prefetch refs).
    spec = pl.BlockSpec((block_rows, width), lambda i, seed_ref: (i, 0))

    z2 = pl.pallas_call(
        _reparam_prng_kernel,
        out_shape=jax.ShapeDtypeStruct((rows, width), mu.dtype),
        grid_spec=pltpu.PrefetchScalarGridSpec(
            num_scalar_prefetch=1,
            grid=grid,
            in_specs=[spec, spec],
            out_specs=spec,
        ),
        compiler_params=pltpu.CompilerParams(
            dimension_semantics=("parallel",),
            vmem_limit_bytes=_VMEM_LIMIT_BYTES,
        ),
        cost_estimate=pl.CostEstimate(
            flops=60 * n,
            transcendentals=8 * n,
            bytes_accessed=3 * n * mu.dtype.itemsize,
        ),
    )(seed_words, mu2, lv2)

    return z2.reshape(-1)[:n].reshape(orig_shape)


def reparameterize_with_eps(mu, logvar, eps, *, block_rows=None):
    """Reference path: eps passed in (bit-reproducible vs. an external RNG)."""
    assert mu.shape == logvar.shape == eps.shape
    orig_shape = mu.shape
    n = int(mu.size)

    mu2 = _lane_dense_2d(mu)
    lv2 = _lane_dense_2d(logvar)
    eps2 = _lane_dense_2d(eps)
    rows, width = mu2.shape

    if block_rows is None:
        block_rows = _pick_block_rows(rows, width, mu2.dtype.itemsize,
                                      target_bytes=2 << 20)
    grid = (pl.cdiv(rows, block_rows),)
    spec = pl.BlockSpec((block_rows, width), lambda i: (i, 0))

    z2 = pl.pallas_call(
        _reparam_eps_kernel,
        out_shape=jax.ShapeDtypeStruct((rows, width), mu.dtype),
        grid_spec=pl.GridSpec(
            grid=grid,
            in_specs=[spec, spec, spec],
            out_specs=spec,
        ),
        compiler_params=pltpu.CompilerParams(
            dimension_semantics=("parallel",),
            vmem_limit_bytes=_VMEM_LIMIT_BYTES,
        ),
        cost_estimate=pl.CostEstimate(
            flops=4 * n,
            transcendentals=n,
            bytes_accessed=4 * n * mu.dtype.itemsize,
        ),
    )(mu2, lv2, eps2)

    return z2.reshape(-1)[:n].reshape(orig_shape)


# ---------------------------------------------------------------------------
# Module
# ---------------------------------------------------------------------------

class BaseVAE:
    """JAX/Pallas port of the abstract BaseVAE."""

    def encode(self, x):
        # TODO(synk): abstract in the PyTorch source (raises NotImplementedError)
        raise NotImplementedError

    def decode(self, z):
        # TODO(synk): abstract in the PyTorch source (raises NotImplementedError)
        raise NotImplementedError

    def reparameterize(self, mu, logvar, key, *, use_pallas=None):
        if use_pallas is None:
            use_pallas = mu.size >= _SMALL_ELEMENTS
        if not use_pallas:
            # Tiny latents: one vreg of work; let XLA fuse the elementwise ops.
            eps = jax.random.normal(key, mu.shape, mu.dtype)
            return eps * jnp.exp(0.5 * logvar) + mu
        # Seed comes straight from the key bits (no extra randint dispatch).
        return reparameterize_pallas(mu, logvar, _key_to_seed_words(key))

    def forward(self, x):
        # TODO(synk): abstract in the PyTorch source (raises NotImplementedError)
        raise NotImplementedError


if __name__ == "__main__":
    key = jax.random.PRNGKey(0)
    k_mu, k_lv, k_eps, k_sample = jax.random.split(key, 4)

    # 1) Exact-math check with the eps-input reference kernel vs pure JAX.
    B, D = 8, 128
    mu = jax.random.normal(k_mu, (B, D), jnp.float32)
    logvar = jax.random.normal(k_lv, (B, D), jnp.float32)
    eps = jax.random.normal(k_eps, (B, D), jnp.float32)
    z_kernel = jax.block_until_ready(reparameterize_with_eps(mu, logvar, eps))
    z_ref = eps * jnp.exp(0.5 * logvar) + mu
    assert z_kernel.shape == (B, D) and z_kernel.dtype == jnp.float32
    assert jnp.allclose(z_kernel, z_ref, atol=1e-5, rtol=1e-5)

    # 2) Host-side check of the in-kernel inverse-normal-CDF approximation.
    p_chk = jnp.linspace(1e-4, 1.0 - 1e-4, 2049, dtype=jnp.float32)
    approx = _ndtri_from_uniform(p_chk, 1.0 - p_chk)
    exact = _ndtri_reference(p_chk)
    assert float(jnp.max(jnp.abs(approx - exact))) < 1e-2

    # 3) Performance path: eps drawn on-chip with the counter-based PRNG.
    Bm, Dm = 128, 1024
    mu2 = 0.5 * jax.random.normal(k_mu, (Bm, Dm), jnp.float32)
    logvar2 = 0.1 * jax.random.normal(k_lv, (Bm, Dm), jnp.float32)
    vae = BaseVAE()
    z = jax.block_until_ready(
        vae.reparameterize(mu2, logvar2, k_sample, use_pallas=True))
    assert z.shape == (Bm, Dm) and z.dtype == jnp.float32
    assert bool(jnp.all(jnp.isfinite(z)))

    # Recover eps = (z - mu)/std and sanity-check its statistics (131072 samples).
    eps_rec = (z - mu2) * jnp.exp(-0.5 * logvar2)
    m = float(jnp.mean(eps_rec))
    s = float(jnp.std(eps_rec))
    assert abs(m) < 0.05, m
    assert 0.95 < s < 1.05, s

    # 4) Tiling invariance: the RNG stream depends only on (seed, element
    #    index), so a different block_rows must give the same z.
    seed_words = _key_to_seed_words(k_sample)
    z_a = jax.block_until_ready(reparameterize_pallas(mu2, logvar2, seed_words))
    z_b = jax.block_until_ready(
        reparameterize_pallas(mu2, logvar2, seed_words, block_rows=8))
    assert jnp.allclose(z_a, z_b, atol=1e-6, rtol=0.0)

    print("KERNEL_OK")
</pallas_src>

<mosaic_0001>
module attributes {stable_mosaic.version = 11 : i64} {
  func.func @_reparam_eps_kernel(%arg0: i32, %arg1: memref<1x1024xf32, #tpu.memory_space<vmem>>, %arg2: memref<1x1024xf32, #tpu.memory_space<vmem>>, %arg3: memref<1x1024xf32, #tpu.memory_space<vmem>>, %arg4: memref<1x1024xf32, #tpu.memory_space<vmem>>) attributes {dimension_semantics = [#tpu.dimension_semantics<parallel>], iteration_bounds = array<i64: 1>, scalar_prefetch = 0 : i64, scratch_operands = 0 : i64, tpu.core_type = #tpu.core_type<tc>, window_params = [{transform_indices = @transform_0, window_bounds = array<i64: 1, 1024>}, {transform_indices = @transform_1, window_bounds = array<i64: 1, 1024>}, {transform_indices = @transform_2, window_bounds = array<i64: 1, 1024>}, {transform_indices = @transform_3, window_bounds = array<i64: 1, 1024>}]} {
    %c0 = arith.constant 0 : index
    %c0_0 = arith.constant 0 : index
    %0 = vector.load %arg2[%c0, %c0_0] : memref<1x1024xf32, #tpu.memory_space<vmem>>, vector<1x1024xf32>
    %cst = arith.constant 5.000000e-01 : f32
    %1 = vector.broadcast %cst : f32 to vector<1x1024xf32>
    %2 = arith.mulf %1, %0 : vector<1x1024xf32>
    %3 = math.exp %2 : vector<1x1024xf32>
    %c0_1 = arith.constant 0 : index
    %c0_2 = arith.constant 0 : index
    %4 = vector.load %arg3[%c0_1, %c0_2] : memref<1x1024xf32, #tpu.memory_space<vmem>>, vector<1x1024xf32>
    %5 = arith.mulf %4, %3 : vector<1x1024xf32>
    %c0_3 = arith.constant 0 : index
    %c0_4 = arith.constant 0 : index
    %6 = vector.load %arg1[%c0_3, %c0_4] : memref<1x1024xf32, #tpu.memory_space<vmem>>, vector<1x1024xf32>
    %7 = arith.addf %5, %6 : vector<1x1024xf32>
    %c0_5 = arith.constant 0 : index
    %c0_6 = arith.constant 0 : index
    %8 = vector.load %arg4[%c0_5, %c0_6] : memref<1x1024xf32, #tpu.memory_space<vmem>>, vector<1x1024xf32>
    tpu.vector_store %arg4[%c0_5, %c0_6], %7 {strides = array<i32>} : memref<1x1024xf32, #tpu.memory_space<vmem>>, vector<1x1024xf32>,
    return
  }
  func.func @transform_0(%arg0: i32) -> (i32, i32) {
    %c0_i32 = arith.constant 0 : i32
    %c0_i32_0 = arith.constant 0 : i32
    return %arg0, %c0_i32 : i32, i32
  }
  func.func @transform_1(%arg0: i32) -> (i32, i32) {
    %c0_i32 = arith.constant 0 : i32
    %c0_i32_0 = arith.constant 0 : i32
    return %arg0, %c0_i32 : i32, i32
  }
  func.func @transform_2(%arg0: i32) -> (i32, i32) {
    %c0_i32 = arith.constant 0 : i32
    %c0_i32_0 = arith.constant 0 : i32
    return %arg0, %c0_i32 : i32, i32
  }
  func.func @transform_3(%arg0: i32) -> (i32, i32) {
    %c0_i32 = arith.constant 0 : i32
    %c0_i32_0 = arith.constant 0 : i32
    return %arg0, %c0_i32 : i32, i32
  }
}

</mosaic_0001>

<bundles_post_ra>
// kernel: tpu_custom_call.1
= control target key start
LH: loop header
LB: loop body
LE: loop exit
PB: predicated region body
PF: predicated region fallthrough
CT: control target
= control target key end

     0   :  { %8 = vsyncpa [#allocation3], 0  ;;  %s227_s0 = inlined_call_operand.hbm [shape: f32[1,1024], index: 0, kind: input, shape index: {}]   ;;  %s228_s1 = inlined_call_operand.hbm [shape: f32[1,1024], index: 1, kind: input, shape index: {}]   ;;  %s229_s2 = inlined_call_operand.hbm [shape: f32[1,1024], index: 2, kind: input, shape index: {}]   ;;  %s230_s3 = inlined_call_operand.hbm [shape: f32[1,1024], index: 3, kind: output, shape index: {}]  }
   0x1   :  { %9 = vsyncpa [#allocation6], 0  ;;  %s27_s14 = sshll.u32 %s228_s1, 4  ;;  %s28_s14 = int_to_ptr.hbm [resolvable:$true] %s27_s14 }
   0x2   :  { %10 = vsyncpa [#allocation4], 0  ;;  %s191_s15 = smov [#allocation5]   ;;  %s16_s19 = sshll.u32 %s227_s0, 4  ;;  %s17_s19 = int_to_ptr.hbm [resolvable:$true] %s16_s19 }
   0x3   :  { %s29_s16 = sshll.u32 %s191_s15, 4  ;;  %s192_s20 = smov [#allocation2]   ;;  %s30_s16 = int_to_ptr.vmem [resolvable:$true] %s29_s16 }
   0x4   :  { %32 = dma.hbm_to_vmem [thread:$0]  %s28_s14, 128, %s30_s16, [#allocation6]  }
   0x5   :  { %s18_s21 = sshll.u32 %s192_s20, 4  ;;  %s38_s24 = sshll.u32 %s229_s2, 4  ;;  %s19_s21 = int_to_ptr.vmem [resolvable:$true] %s18_s21  ;;  %s39_s24 = int_to_ptr.hbm [resolvable:$true] %s38_s24 }
   0x6   :  { %21 = dma.hbm_to_vmem [thread:$0]  %s17_s19, 128, %s19_s21, [#allocation3]  }
   0x7   :  { %s193_s1 = smov [#allocation7]  }
   0x8   :  { %s40_s25 = sshll.u32 %s193_s1, 4  ;;  %s41_s25 = int_to_ptr.vmem [resolvable:$true] %s40_s25 }
   0x9   :  { %43 = dma.hbm_to_vmem [thread:$0]  %s39_s24, 128, %s41_s25, [#allocation6]  }
   0xa   :  { %185 = dma.done.wait [#allocation3], 128  }
   0xb   :  { %186 = vsyncadd [#allocation3], 4294967168 }
   0xc   :  { %187 = dma.done.wait [#allocation6], 256  }
   0xd   :  { %188 = vsyncadd [#allocation6], 4294967040  ;;  %v56_v0 = vld [vmem:[#allocation5] sm:$0xff]  ;;  %v60_v3 = vld [vmem:[#allocation7] sm:$0xff]  ;;  %s194_s0 = smov [#allocation8]   ;;  %s72_s28 = sshll.u32 %s230_s3, 4  ;;  %s73_s28 = int_to_ptr.hbm [resolvable:$true] %s72_s28 }
   0xe   :  { %v57_v1 = vmul.f32 0.5, %v56_v0  ;;  %v62_v5 = vld [vmem:[#allocation2] sm:$0xff]  ;;  %s70_s2 = sshll.u32 %s194_s0, 4  ;;  %s71_s2 = int_to_ptr.vmem [resolvable:$true] %s70_s2 }
  0x10   :  { %v58_v2 = vmul.f32 1.442695, %v57_v1 }
  0x12   :  { %87 = vpow2.f32 %v58_v2 }
  0x18   :  { %v88_v4 = vpop.eup %87 }
  0x19   :  { %v61_v6 = vmul.f32 %v88_v4, %v60_v3 }
  0x1b   :  { %v63_v7 = vadd.f32 %v62_v5, %v61_v6 }
  0x1d   :  { %64 = vst [vmem:[#allocation8] sm:$0xff] %v63_v7 }
  0x1e   :  { %75 = dma.vmem_to_hbm [thread:$0]  %s71_s2, 128, %s73_s28, [#allocation4]  }
  0x1f   :  { %189 = dma.done.wait [#allocation4], 128  }
  0x20   :  { %190 = vsyncadd [#allocation4], 4294967168 }
  0x21   :  { %80 = vsyncpa [#allocation3], 1 }
  0x22   :  { %81 = vsyncpa [#allocation6], 1 }
  0x23   :  { %82 = vsyncpa [#allocation4], 1 }

</bundles_post_ra>
